<compile_context>
chip_gen: v7x
topology: tpu7x:2x2x1
jax: 0.10.0
libtpu: 0.0.40
codegen_flags: <defaults>
</compile_context>

<pallas_src>
import functools

import jax
import jax.numpy as jnp
from jax.experimental import pallas as pl
from jax.experimental.pallas import tpu as pltpu

OUT_PAD = 128          # lane-dense head-matmul width (q1 -> col 0, q2 -> col 1)
MAX_BATCH_TILE = 512   # batch tile for the large-batch (training) path


def _round_up(x, m):
    return ((x + m - 1) // m) * m


# ---------------------------------------------------------------------------
# Kernels
# ---------------------------------------------------------------------------
def _qnet_kernel_fused_l2(s_ref, a_ref, w1s_ref, w1a_ref, b1_ref,
                          w2_ref, b2_ref, w3_ref, b3_ref, out_ref):
    """Twin-Q MLP, layer 2 fused block-diagonally (for 2h <= MXU width)."""
    wdt = w1s_ref.dtype
    # Layer 1 (both heads fused along the output axis). Inputs cast to bf16
    # in-register; f32 accumulation on the MXU; ReLU on the VPU.
    h1 = jnp.dot(s_ref[...].astype(wdt), w1s_ref[...],
                 preferred_element_type=jnp.float32)
    h1 = h1 + jnp.dot(a_ref[...].astype(wdt), w1a_ref[...],
                      preferred_element_type=jnp.float32)
    h1 = jnp.maximum(h1 + b1_ref[...], 0.0).astype(wdt)

    # Layer 2: block-diagonal (2h, 2h) keeps the two heads independent while
    # issuing a single MXU matmul.
    h2 = jnp.dot(h1, w2_ref[...], preferred_element_type=jnp.float32) + b2_ref[...]
    h2 = jnp.maximum(h2, 0.0).astype(wdt)

    # Layer 3: lane-dense 128-wide head matmul (only cols 0/1 are non-zero).
    q = jnp.dot(h2, w3_ref[...], preferred_element_type=jnp.float32) + b3_ref[...]

    # Transposed store: only 2 of 128 lanes are useful, so flip to (2, TB) on
    # the XLU (idle in this kernel) and write a 64x smaller lane-dense slab.
    out_ref[...] = q.T[:2, :].astype(out_ref.dtype)


def _qnet_kernel_split_l2(hidden, s_ref, a_ref, w1s_ref, w1a_ref, b1_ref,
                          w2a_ref, w2b_ref, b2_ref, w3_ref, b3_ref, out_ref):
    """Twin-Q MLP with layer 2 kept as two separate dots (large hidden dims)."""
    wdt = w1s_ref.dtype
    h = hidden
    h1 = jnp.dot(s_ref[...].astype(wdt), w1s_ref[...],
                 preferred_element_type=jnp.float32)
    h1 = h1 + jnp.dot(a_ref[...].astype(wdt), w1a_ref[...],
                      preferred_element_type=jnp.float32)
    h1 = jnp.maximum(h1 + b1_ref[...], 0.0).astype(wdt)

    # Layer 2: two real (TB,h)@(h,h) dots -> no zero-block FLOPs on the MXU.
    h2a = jnp.dot(h1[:, :h], w2a_ref[...],
                  preferred_element_type=jnp.float32) + b2_ref[:, :h]
    h2b = jnp.dot(h1[:, h:], w2b_ref[...],
                  preferred_element_type=jnp.float32) + b2_ref[:, h:]
    h2a = jnp.maximum(h2a, 0.0).astype(wdt)
    h2b = jnp.maximum(h2b, 0.0).astype(wdt)

    q = (jnp.dot(h2a, w3_ref[:h, :], preferred_element_type=jnp.float32)
         + jnp.dot(h2b, w3_ref[h:, :], preferred_element_type=jnp.float32)
         + b3_ref[...])
    out_ref[...] = q.T[:2, :].astype(out_ref.dtype)


# ---------------------------------------------------------------------------
# Parameter fusion (done once, not per forward call)
# ---------------------------------------------------------------------------
def fuse_qnetwork_params(params, num_inputs, *, l2_fuse_max_hidden=128,
                         weight_dtype=jnp.bfloat16):
    """Build the fused (q1 || q2) weights consumed by the kernel.

    Weights are stored in `weight_dtype` (bf16 by default -> full MXU rate,
    half the VMEM residency); biases stay f32 and are added to the f32
    accumulators.  Biases are expected as (1, h) row vectors.
    Use l2_fuse_max_hidden=64 on v5e (128-wide MXU).
    """
    q1, q2 = params["q1"], params["q2"]
    h = q1["w2"].shape[0]

    w1 = jnp.concatenate([q1["w1"], q2["w1"]], axis=1)              # (in, 2h)
    fused = {
        "w1s": w1[:num_inputs].astype(weight_dtype),                # (S, 2h)
        "w1a": w1[num_inputs:].astype(weight_dtype),                # (A, 2h)
        "b1": jnp.concatenate([q1["b1"], q2["b1"]], axis=1).astype(jnp.float32),
        "b2": jnp.concatenate([q1["b2"], q2["b2"]], axis=1).astype(jnp.float32),
    }

    if h <= l2_fuse_max_hidden:
        # Block-diagonal fusion is exact and free while 2h fits one MXU pass.
        zeros_hh = jnp.zeros((h, h), q1["w2"].dtype)
        fused["w2"] = jnp.block([[q1["w2"], zeros_hh],
                                 [zeros_hh, q2["w2"]]]).astype(weight_dtype)
    else:
        fused["w2a"] = q1["w2"].astype(weight_dtype)
        fused["w2b"] = q2["w2"].astype(weight_dtype)

    w3 = jnp.zeros((2 * h, OUT_PAD), jnp.float32)
    w3 = w3.at[:h, 0:1].set(q1["w3"]).at[h:, 1:2].set(q2["w3"])
    fused["w3"] = w3.astype(weight_dtype)                           # (2h, 128)
    b3 = jnp.zeros((1, OUT_PAD), jnp.float32)
    b3 = b3.at[0, 0].set(q1["b3"][0, 0]).at[0, 1].set(q2["b3"][0, 0])
    fused["b3"] = b3
    return fused


# ---------------------------------------------------------------------------
# Forward wrapper
# ---------------------------------------------------------------------------
@jax.jit
def qnetwork_forward(state, action, fused):
    """state: (B, num_inputs), action: (B, num_actions), f32.

    Returns (q1, q2), each (B, 1) f32.
    """
    B, num_inputs = state.shape
    num_actions = action.shape[1]
    two_h = fused["b1"].shape[1]
    hidden = two_h // 2
    split_l2 = "w2" not in fused

    # Batch tiling.  Small B: one full-batch tile (latency path).  B >= 256:
    # >=2 grid steps of up to MAX_BATCH_TILE rows, 128-aligned so the
    # transposed (2, TB) output block stays lane-aligned; weights remain
    # VMEM-resident and the "parallel" axis shards across v7x's 2 TensorCores.
    Bp = _round_up(B, 8)
    if Bp >= 256:
        TB = min(MAX_BATCH_TILE, _round_up(pl.cdiv(Bp, 2), 128))
        Bp = _round_up(Bp, TB)
    else:
        TB = Bp
    if Bp != B:
        pad = ((0, Bp - B), (0, 0))
        state = jnp.pad(state, pad)
        action = jnp.pad(action, pad)

    # VMEM-resident blocks (constant block index across the batch grid).
    res = lambda shape: pl.BlockSpec(shape, lambda i: (0, 0))

    in_specs = [
        pl.BlockSpec((TB, num_inputs), lambda i: (i, 0)),    # state tile
        pl.BlockSpec((TB, num_actions), lambda i: (i, 0)),   # action tile
        res((num_inputs, two_h)),                            # w1_s
        res((num_actions, two_h)),                           # w1_a
        res((1, two_h)),                                     # b1
    ]
    if split_l2:
        kernel = functools.partial(_qnet_kernel_split_l2, hidden)
        in_specs += [res((hidden, hidden)), res((hidden, hidden))]
        l2_weights = (fused["w2a"], fused["w2b"])
    else:
        kernel = _qnet_kernel_fused_l2
        in_specs += [res((two_h, two_h))]
        l2_weights = (fused["w2"],)
    in_specs += [res((1, two_h)),            # b2
                 res((two_h, OUT_PAD)),      # w3 (lane-dense)
                 res((1, OUT_PAD))]          # b3

    out = pl.pallas_call(
        kernel,
        out_shape=jax.ShapeDtypeStruct((2, Bp), jnp.float32),
        grid=(Bp // TB,),
        in_specs=in_specs,
        out_specs=pl.BlockSpec((2, TB), lambda i: (0, i)),
        compiler_params=pltpu.CompilerParams(
            dimension_semantics=("parallel",),
            vmem_limit_bytes=32 * 1024 * 1024),
    )(state, action, fused["w1s"], fused["w1a"], fused["b1"],
      *l2_weights, fused["b2"], fused["w3"], fused["b3"])

    q1 = out[0, :B].reshape(B, 1)
    q2 = out[1, :B].reshape(B, 1)
    return q1, q2


# ---------------------------------------------------------------------------
# Init (mirrors weights_init_: xavier_uniform weights, zero biases) + refs
# ---------------------------------------------------------------------------
def _xavier_uniform(key, fan_in, fan_out):
    limit = jnp.sqrt(6.0 / (fan_in + fan_out))
    return jax.random.uniform(key, (fan_in, fan_out), jnp.float32, -limit, limit)


def _init_q_net(key, input_dim, hidden_dim):
    h = hidden_dim
    k1, k2, k3 = jax.random.split(key, 3)
    return {
        "w1": _xavier_uniform(k1, input_dim, h), "b1": jnp.zeros((1, h), jnp.float32),
        "w2": _xavier_uniform(k2, h, h),         "b2": jnp.zeros((1, h), jnp.float32),
        "w3": _xavier_uniform(k3, h, 1),         "b3": jnp.zeros((1, 1), jnp.float32),
    }


def init_qnetwork_params(key, num_inputs, num_actions, hidden_dim):
    kq1, kq2 = jax.random.split(key)
    in_dim = num_inputs + num_actions
    return {"q1": _init_q_net(kq1, in_dim, hidden_dim),
            "q2": _init_q_net(kq2, in_dim, hidden_dim)}


def _reference_forward(state, action, params):
    """Pure-f32 reference matching the torch module semantics."""
    xu = jnp.concatenate([state, action], axis=1)

    def mlp(p):
        h1 = jnp.maximum(xu @ p["w1"] + p["b1"], 0.0)
        h2 = jnp.maximum(h1 @ p["w2"] + p["b2"], 0.0)
        return h2 @ p["w3"] + p["b3"]

    return mlp(params["q1"]), mlp(params["q2"])


def _reference_forward_bf16(state, action, params):
    """bf16-weight / f32-accumulate reference matching the kernel's numerics."""
    xu = jnp.concatenate([state, action], axis=1).astype(jnp.bfloat16)

    def mlp(p):
        h1 = jnp.maximum(jnp.dot(xu, p["w1"].astype(jnp.bfloat16),
                                 preferred_element_type=jnp.float32) + p["b1"], 0.0)
        h1 = h1.astype(jnp.bfloat16)
        h2 = jnp.maximum(jnp.dot(h1, p["w2"].astype(jnp.bfloat16),
                                 preferred_element_type=jnp.float32) + p["b2"], 0.0)
        h2 = h2.astype(jnp.bfloat16)
        return jnp.dot(h2, p["w3"].astype(jnp.bfloat16),
                       preferred_element_type=jnp.float32) + p["b3"]

    return mlp(params["q1"]), mlp(params["q2"])


# ---------------------------------------------------------------------------
# Demo / self-check
# ---------------------------------------------------------------------------
if __name__ == "__main__":
    root = jax.random.PRNGKey(0)

    def run_case(key, batch, num_inputs, num_actions, hidden_dim, name):
        kp, ks, ka = jax.random.split(key, 3)
        params = init_qnetwork_params(kp, num_inputs, num_actions, hidden_dim)
        fused = fuse_qnetwork_params(params, num_inputs)
        state = jax.random.normal(ks, (batch, num_inputs), jnp.float32)
        action = jax.random.normal(ka, (batch, num_actions), jnp.float32)

        q1, q2 = qnetwork_forward(state, action, fused)
        jax.block_until_ready((q1, q2))
        assert q1.shape == (batch, 1) and q2.shape == (batch, 1), name

        # Tight check vs. a bf16-weight/f32-accum reference (kernel numerics),
        # loose check vs. the pure-f32 torch-module semantics.
        bq1, bq2 = _reference_forward_bf16(state, action, params)
        rq1, rq2 = _reference_forward(state, action, params)
        assert jnp.allclose(q1, bq1, atol=5e-3, rtol=5e-3), name
        assert jnp.allclose(q2, bq2, atol=5e-3, rtol=5e-3), name
        assert jnp.allclose(q1, rq1, atol=5e-2, rtol=5e-2), name
        assert jnp.allclose(q2, rq2, atol=5e-2, rtol=5e-2), name

    # Small "acting" path: fused block-diagonal layer 2, single batch tile.
    run_case(jax.random.fold_in(root, 0), 8, 16, 8, 32, "small")
    # "Training" path: split layer 2 (h > 128), padded batch, >=2 parallel
    # grid steps (engages both v7x TensorCores).
    run_case(jax.random.fold_in(root, 1), 300, 16, 8, 256, "large")

    print("KERNEL_OK")
</pallas_src>

<mosaic_0001>
module attributes {stable_mosaic.version = 11 : i64} {
  func.func @_qnet_kernel_fused_l2(%arg0: i32, %arg1: memref<8x16xf32, #tpu.memory_space<vmem>>, %arg2: memref<8x8xf32, #tpu.memory_space<vmem>>, %arg3: memref<16x64xbf16, #tpu.memory_space<vmem>>, %arg4: memref<8x64xbf16, #tpu.memory_space<vmem>>, %arg5: memref<1x64xf32, #tpu.memory_space<vmem>>, %arg6: memref<64x64xbf16, #tpu.memory_space<vmem>>, %arg7: memref<1x64xf32, #tpu.memory_space<vmem>>, %arg8: memref<64x128xbf16, #tpu.memory_space<vmem>>, %arg9: memref<1x128xf32, #tpu.memory_space<vmem>>, %arg10: memref<2x8xf32, #tpu.memory_space<vmem>>) attributes {dimension_semantics = [#tpu.dimension_semantics<parallel>], iteration_bounds = array<i64: 1>, scalar_prefetch = 0 : i64, scratch_operands = 0 : i64, tpu.core_type = #tpu.core_type<tc>, window_params = [{transform_indices = @transform_0, window_bounds = array<i64: 8, 16>}, {transform_indices = @transform_1, window_bounds = array<i64: 8, 8>}, {pipeline_mode = #tpu.pipeline_mode<synchronous>, transform_indices = @transform_2, window_bounds = array<i64: 16, 64>}, {pipeline_mode = #tpu.pipeline_mode<synchronous>, transform_indices = @transform_3, window_bounds = array<i64: 8, 64>}, {pipeline_mode = #tpu.pipeline_mode<synchronous>, transform_indices = @transform_4, window_bounds = array<i64: 1, 64>}, {pipeline_mode = #tpu.pipeline_mode<synchronous>, transform_indices = @transform_5, window_bounds = array<i64: 64, 64>}, {pipeline_mode = #tpu.pipeline_mode<synchronous>, transform_indices = @transform_6, window_bounds = array<i64: 1, 64>}, {pipeline_mode = #tpu.pipeline_mode<synchronous>, transform_indices = @transform_7, window_bounds = array<i64: 64, 128>}, {pipeline_mode = #tpu.pipeline_mode<synchronous>, transform_indices = @transform_8, window_bounds = array<i64: 1, 128>}, {transform_indices = @transform_9, window_bounds = array<i64: 2, 8>}]} {
    %c0 = arith.constant 0 : index
    %c0_0 = arith.constant 0 : index
    %0 = vector.load %arg1[%c0, %c0_0] : memref<8x16xf32, #tpu.memory_space<vmem>>, vector<8x16xf32>
    %1 = arith.truncf %0 : vector<8x16xf32> to vector<8x16xbf16>
    %c0_1 = arith.constant 0 : index
    %c0_2 = arith.constant 0 : index
    %2 = vector.load %arg3[%c0_1, %c0_2] : memref<16x64xbf16, #tpu.memory_space<vmem>>, vector<16x64xbf16>
    %cst = arith.constant dense<0.000000e+00> : vector<8x64xf32>
    %3 = tpu.matmul %1, %2, %cst {dimension_numbers = #tpu.dot_dimension_numbers<[1], [0], [0], [1], [0, 0, 1, 1], [], []>} : vector<8x16xbf16>, vector<16x64xbf16>, vector<8x64xf32> -> vector<8x64xf32>
    %c0_3 = arith.constant 0 : index
    %c0_4 = arith.constant 0 : index
    %4 = vector.load %arg2[%c0_3, %c0_4] : memref<8x8xf32, #tpu.memory_space<vmem>>, vector<8x8xf32>
    %5 = arith.truncf %4 : vector<8x8xf32> to vector<8x8xbf16>
    %c0_5 = arith.constant 0 : index
    %c0_6 = arith.constant 0 : index
    %6 = vector.load %arg4[%c0_5, %c0_6] : memref<8x64xbf16, #tpu.memory_space<vmem>>, vector<8x64xbf16>
    %cst_7 = arith.constant dense<0.000000e+00> : vector<8x64xf32>
    %7 = tpu.matmul %5, %6, %cst_7 {dimension_numbers = #tpu.dot_dimension_numbers<[1], [0], [0], [1], [0, 0, 1, 1], [], []>} : vector<8x8xbf16>, vector<8x64xbf16>, vector<8x64xf32> -> vector<8x64xf32>
    %8 = arith.addf %3, %7 : vector<8x64xf32>
    %c0_8 = arith.constant 0 : index
    %c0_9 = arith.constant 0 : index
    %9 = vector.load %arg5[%c0_8, %c0_9] : memref<1x64xf32, #tpu.memory_space<vmem>>, vector<1x64xf32>
    %10 = vector.broadcast %9 : vector<1x64xf32> to vector<8x64xf32>
    %11 = arith.addf %8, %10 : vector<8x64xf32>
    %cst_10 = arith.constant 0.000000e+00 : f32
    %12 = vector.broadcast %cst_10 : f32 to vector<8x64xf32>
    %13 = arith.maximumf %11, %12 : vector<8x64xf32>
    %14 = arith.truncf %13 : vector<8x64xf32> to vector<8x64xbf16>
    %c0_11 = arith.constant 0 : index
    %c0_12 = arith.constant 0 : index
    %15 = vector.load %arg6[%c0_11, %c0_12] : memref<64x64xbf16, #tpu.memory_space<vmem>>, vector<64x64xbf16>
    %cst_13 = arith.constant dense<0.000000e+00> : vector<8x64xf32>
    %16 = tpu.matmul %14, %15, %cst_13 {dimension_numbers = #tpu.dot_dimension_numbers<[1], [0], [0], [1], [0, 0, 1, 1], [], []>} : vector<8x64xbf16>, vector<64x64xbf16>, vector<8x64xf32> -> vector<8x64xf32>
    %c0_14 = arith.constant 0 : index
    %c0_15 = arith.constant 0 : index
    %17 = vector.load %arg7[%c0_14, %c0_15] : memref<1x64xf32, #tpu.memory_space<vmem>>, vector<1x64xf32>
    %18 = vector.broadcast %17 : vector<1x64xf32> to vector<8x64xf32>
    %19 = arith.addf %16, %18 : vector<8x64xf32>
    %cst_16 = arith.constant 0.000000e+00 : f32
    %20 = vector.broadcast %cst_16 : f32 to vector<8x64xf32>
    %21 = arith.maximumf %19, %20 : vector<8x64xf32>
    %22 = arith.truncf %21 : vector<8x64xf32> to vector<8x64xbf16>
    %c0_17 = arith.constant 0 : index
    %c0_18 = arith.constant 0 : index
    %23 = vector.load %arg8[%c0_17, %c0_18] : memref<64x128xbf16, #tpu.memory_space<vmem>>, vector<64x128xbf16>
    %cst_19 = arith.constant dense<0.000000e+00> : vector<8x128xf32>
    %24 = tpu.matmul %22, %23, %cst_19 {dimension_numbers = #tpu.dot_dimension_numbers<[1], [0], [0], [1], [0, 0, 1, 1], [], []>} : vector<8x64xbf16>, vector<64x128xbf16>, vector<8x128xf32> -> vector<8x128xf32>
    %c0_20 = arith.constant 0 : index
    %c0_21 = arith.constant 0 : index
    %25 = vector.load %arg9[%c0_20, %c0_21] : memref<1x128xf32, #tpu.memory_space<vmem>>, vector<1x128xf32>
    %26 = vector.broadcast %25 : vector<1x128xf32> to vector<8x128xf32>
    %27 = arith.addf %24, %26 : vector<8x128xf32>
    %28 = tpu.transpose %27, [1, 0] : vector<8x128xf32> -> vector<128x8xf32>
    %29 = vector.extract_strided_slice %28 {offsets = [0, 0], sizes = [2, 8], strides = [1, 1]} : vector<128x8xf32> to vector<2x8xf32>
    %c0_22 = arith.constant 0 : index
    %c0_23 = arith.constant 0 : index
    %30 = vector.load %arg10[%c0_22, %c0_23] : memref<2x8xf32, #tpu.memory_space<vmem>>, vector<2x8xf32>
    tpu.vector_store %arg10[%c0_22, %c0_23], %29 {strides = array<i32>} : memref<2x8xf32, #tpu.memory_space<vmem>>, vector<2x8xf32>,
    return
  }
  func.func @transform_0(%arg0: i32) -> (i32, i32) {
    %c0_i32 = arith.constant 0 : i32
    %c0_i32_0 = arith.constant 0 : i32
    return %arg0, %c0_i32 : i32, i32
  }
  func.func @transform_1(%arg0: i32) -> (i32, i32) {
    %c0_i32 = arith.constant 0 : i32
    %c0_i32_0 = arith.constant 0 : i32
    return %arg0, %c0_i32 : i32, i32
  }
  func.func @transform_2(%arg0: i32) -> (i32, i32) {
    %c0_i32 = arith.constant 0 : i32
    %c0_i32_0 = arith.constant 0 : i32
    %c0_i32_1 = arith.constant 0 : i32
    return %c0_i32, %c0_i32_0 : i32, i32
  }
  func.func @transform_3(%arg0: i32) -> (i32, i32) {
    %c0_i32 = arith.constant 0 : i32
    %c0_i32_0 = arith.constant 0 : i32
    %c0_i32_1 = arith.constant 0 : i32
    return %c0_i32, %c0_i32_0 : i32, i32
  }
  func.func @transform_4(%arg0: i32) -> (i32, i32) {
    %c0_i32 = arith.constant 0 : i32
    %c0_i32_0 = arith.constant 0 : i32
    %c0_i32_1 = arith.constant 0 : i32
    return %c0_i32, %c0_i32_0 : i32, i32
  }
  func.func @transform_5(%arg0: i32) -> (i32, i32) {
    %c0_i32 = arith.constant 0 : i32
    %c0_i32_0 = arith.constant 0 : i32
    %c0_i32_1 = arith.constant 0 : i32
    return %c0_i32, %c0_i32_0 : i32, i32
  }
  func.func @transform_6(%arg0: i32) -> (i32, i32) {
    %c0_i32 = arith.constant 0 : i32
    %c0_i32_0 = arith.constant 0 : i32
    %c0_i32_1 = arith.constant 0 : i32
    return %c0_i32, %c0_i32_0 : i32, i32
  }
  func.func @transform_7(%arg0: i32) -> (i32, i32) {
    %c0_i32 = arith.constant 0 : i32
    %c0_i32_0 = arith.constant 0 : i32
    %c0_i32_1 = arith.constant 0 : i32
    return %c0_i32, %c0_i32_0 : i32, i32
  }
  func.func @transform_8(%arg0: i32) -> (i32, i32) {
    %c0_i32 = arith.constant 0 : i32
    %c0_i32_0 = arith.constant 0 : i32
    %c0_i32_1 = arith.constant 0 : i32
    return %c0_i32, %c0_i32_0 : i32, i32
  }
  func.func @transform_9(%arg0: i32) -> (i32, i32) {
    %c0_i32 = arith.constant 0 : i32
    %c0_i32_0 = arith.constant 0 : i32
    return %c0_i32, %arg0 : i32, i32
  }
}

</mosaic_0001>

<bundles_post_ra>
// kernel: qnetwork_forward.1
= control target key start
LH: loop header
LB: loop body
LE: loop exit
PB: predicated region body
PF: predicated region fallthrough
CT: control target
= control target key end

     0   :  { %14 = vsyncpa [#allocation3], 0  ;;  %s714_s0 = inlined_call_operand.hbm [shape: f32[8,16], index: 0, kind: input, shape index: {}]   ;;  %s715_s1 = inlined_call_operand.hbm [shape: f32[8,8], index: 1, kind: input, shape index: {}]   ;;  %s716_s2 = inlined_call_operand.vmem [shape: bf16[16,64], index: 2, kind: input, shape index: {}]   ;;  %s717_s3 = inlined_call_operand.vmem [shape: bf16[8,64], index: 3, kind: input, shape index: {}]   ;;  %s718_s4 = inlined_call_operand.vmem [shape: f32[1,64], index: 4, kind: input, shape index: {}]   ;;  %s719_s5 = inlined_call_operand.hbm [shape: bf16[64,64], index: 5, kind: input, shape index: {}]   ;;  %s720_s6 = inlined_call_operand.vmem [shape: f32[1,64], index: 6, kind: input, shape index: {}]   ;;  %s721_s7 = inlined_call_operand.hbm [shape: bf16[64,128], index: 7, kind: input, shape index: {}]   ;;  %s722_s8 = inlined_call_operand.vmem [shape: f32[1,128], index: 8, kind: input, shape index: {}]   ;;  %s723_s9 = inlined_call_operand.vmem [shape: f32[2,8], index: 9, kind: output, shape index: {}]  }
   0x1   :  { %15 = vsyncpa [#allocation5], 0 }
   0x2   :  { %16 = vsyncpa [#allocation8], 0  ;;  %s584_s30 = smov [#allocation4]   ;;  %s585_s11 = smov [#allocation2]  }
   0x3   :  { %s33_s10 = sshll.u32 %s584_s30, 4  ;;  %s23_s12 = sshll.u32 %s585_s11, 4  ;;  %s34_s10 = int_to_ptr.vmem [resolvable:$true] %s33_s10  ;;  %s24_s12 = int_to_ptr.vmem [resolvable:$true] %s23_s12 }
   0x4   :  { %s490_s15 = scalar_lea.hbm %s715_s1, 128 }
   0x5   :  { %p491_p0 = scmp.ne.s32.totalorder %s715_s1, %s490_s15  ;;  %p494_p1 = scmp.lt.u32.totalorder %s490_s15, %s715_s1 }
   0x7   :  { %p496_p2 = pnand %p494_p1, %p491_p0 }
   0x9   :  { %499 = shalt.err (!%p496_p2)
}
   0xa   :  { %s500_s20 = scalar_lea.vmem %s34_s10, 128  ;;  %p505_p4 = scmp.lt.s32.totalorder %s34_s10, %s34_s10 }
   0xb   :  { %p501_p3 = scmp.ne.s32.totalorder %s34_s10, %s500_s20  ;;  %p506_p5 = scmp.lt.s32.totalorder %s500_s20, %s500_s20 }
   0xd   :  { %p507_p6 = por %p506_p5, %p505_p4 }
   0xf   :  { %p508_p7 = pnand %p507_p6, %p501_p3 }
  0x11   :  { %511 = shalt.err (!%p508_p7)
}
  0x12   :  { %36 = dma.hbm_to_vmem [thread:$0]  %s715_s1, 128, %s34_s10, [#allocation5]  }
  0x13   :  { %s512_s25 = scalar_lea.hbm %s714_s0, 128 }
  0x14   :  { %p513_p8 = scmp.ne.s32.totalorder %s714_s0, %s512_s25  ;;  %p516_p9 = scmp.lt.u32.totalorder %s512_s25, %s714_s0 }
  0x16   :  { %p518_p10 = pnand %p516_p9, %p513_p8 }
  0x18   :  { %521 = shalt.err (!%p518_p10)
}
  0x19   :  { %s522_s30 = scalar_lea.vmem %s24_s12, 128  ;;  %p527_p12 = scmp.lt.s32.totalorder %s24_s12, %s24_s12 }
  0x1a   :  { %p523_p11 = scmp.ne.s32.totalorder %s24_s12, %s522_s30  ;;  %p528_p13 = scmp.lt.s32.totalorder %s522_s30, %s522_s30 }
  0x1c   :  { %p529_p0 = por %p528_p13, %p527_p12 }
  0x1e   :  { %p530_p1 = pnand %p529_p0, %p523_p11 }
  0x20   :  { %533 = shalt.err (!%p530_p1)
}
  0x21   :  { %26 = dma.hbm_to_vmem [thread:$0]  %s714_s0, 128, %s24_s12, [#allocation3]  }
  0x22   :  { %s586_s11 = smov [#allocation6]   ;;  %s534_s16 = scalar_lea.hbm %s719_s5, 512 }
  0x23   :  { %s48_s13 = sshll.u32 %s586_s11, 4  ;;  %p535_p2 = scmp.ne.s32.totalorder %s719_s5, %s534_s16  ;;  %s49_s13 = int_to_ptr.vmem [resolvable:$true] %s48_s13 }
  0x24   :  { %p538_p3 = scmp.lt.u32.totalorder %s534_s16, %s719_s5 }
  0x26   :  { %p540_p4 = pnand %p538_p3, %p535_p2 }
  0x28   :  { %543 = shalt.err (!%p540_p4)
}
  0x29   :  { %s544_s21 = scalar_lea.vmem %s49_s13, 512  ;;  %p549_p6 = scmp.lt.s32.totalorder %s49_s13, %s49_s13 }
  0x2a   :  { %p545_p5 = scmp.ne.s32.totalorder %s49_s13, %s544_s21  ;;  %p550_p7 = scmp.lt.s32.totalorder %s544_s21, %s544_s21 }
  0x2c   :  { %p551_p8 = por %p550_p7, %p549_p6 }
  0x2e   :  { %p552_p9 = pnand %p551_p8, %p545_p5 }
  0x30   :  { %555 = shalt.err (!%p552_p9)
}
  0x31   :  { %s587_s0 = smov 64   ;;  %s588_s12 = smov 4  }
  0x32   :  { %54 = dma.hbm_to_vmem [thread:$0]  %s719_s5, 512, %s49_s13, [#allocation5], %s587_s0, %s587_s0, %s588_s12  }
  0x33   :  { %s589_s24 = smov [#allocation7]   ;;  %s556_s28 = scalar_lea.hbm %s721_s7, 512 }
  0x34   :  { %s62_s25 = sshll.u32 %s589_s24, 4  ;;  %p557_p10 = scmp.ne.s32.totalorder %s721_s7, %s556_s28  ;;  %s63_s25 = int_to_ptr.vmem [resolvable:$true] %s62_s25 }
  0x35   :  { %p560_p11 = scmp.lt.u32.totalorder %s556_s28, %s721_s7 }
  0x37   :  { %p562_p12 = pnand %p560_p11, %p557_p10 }
  0x39   :  { %565 = shalt.err (!%p562_p12)
}
  0x3a   :  { %s566_s11 = scalar_lea.vmem %s63_s25, 512  ;;  %p571_p0 = scmp.lt.s32.totalorder %s63_s25, %s63_s25 }
  0x3b   :  { %p567_p13 = scmp.ne.s32.totalorder %s63_s25, %s566_s11  ;;  %p572_p1 = scmp.lt.s32.totalorder %s566_s11, %s566_s11 }
  0x3d   :  { %p573_p2 = por %p572_p1, %p571_p0 }
  0x3f   :  { %p574_p3 = pnand %p573_p2, %p567_p13 }
  0x41   :  { %577 = shalt.err (!%p574_p3)
}
  0x42   :  { %68 = dma.hbm_to_vmem [thread:$0]  %s721_s7, 512, %s63_s25, [#allocation8], %s587_s0, %s587_s0, %s588_s12  }
  0x43   :  { %578 = dma.done.wait [#allocation3], 128  }
  0x44   :  { %579 = vsyncadd [#allocation3], 4294967168 }
  0x45   :  { %580 = dma.done.wait [#allocation5], 640  }
  0x46   :  { %581 = vsyncadd [#allocation5], 4294966656 }
  0x47   :  { %582 = dma.done.wait [#allocation8], 512  }
  0x48   :  { %583 = vsyncadd [#allocation8], 4294966784  ;;  %v590_v0 = vmov 0.0   ;;  %vm591_vm0 = vmmov 0   ;;  %vm95_vm1 = vcmask 1043456   ;;  %v481_v3 = vld [vmem:[%s716_s2] sm:$0xff]  }
  0x49   :  { %437 = vmatprep.subr.bf16.mxu0 %v590_v0  ;;  %443 = vmatprep.subr.bf16.mxu1 %v590_v0  ;;  %v90_v1 = vld [vmem:[%s717_s3] sm:$0xf]  ;;  %v88_v4 = vld [vmem:[#allocation4] sm:$0xff]  ;;  %vm91_vm2 = vcmask 64512   ;;  %v482_v8 = vld [vmem:[#allocation6] sm:$0xff]   ;;  %vm145_vm3 = vcmask 130048  }
  0x4a   :  { %439 = vmatprep.mubr.msk.bf16.mxu0 %vm591_vm0, %v590_v0  ;;  %445 = vmatprep.mubr.msk.bf16.mxu1 %vm591_vm0, %v590_v0  ;;  %v97_v2 = vsel %vm95_vm1, %v90_v1, 0  ;;  %v84_v5 = vld [vmem:[#allocation2] sm:$0xff]  ;;  %v89_v6 = vpack.c.bf16 %v88_v4, %v88_v4  ;;  %v483_v9 = vld [vmem:[#allocation6 + $0x8] sm:$0xff]   ;;  %v485_v11 = vld [vmem:[#allocation6 + $0x18] sm:$0xff]   ;;  %vm238_vm4 = vcmask 523264   ;;  %vm398_vm5 = vcmask 58368  }
  0x4b   :  { %438 = vmatpush3.bf16.msra.mxu0 %v97_v2  ;;  %v85_v7 = vpack.c.bf16 %v84_v5, %v84_v5  ;;  %444 = vmatpush3.bf16.msra.mxu1 %v481_v3  ;;  %v484_v10 = vld [vmem:[#allocation6 + $0x10] sm:$0xff]   ;;  %v486_v12 = vld [vmem:[#allocation7] sm:$0xff]   ;;  %v487_v13 = vld [vmem:[#allocation7 + $0x8] sm:$0xff]  }
  0x4c   :  { %449 = vmatprep.subr.bf16.mxu0 %v590_v0  ;;  %461 = vmatprep.subr.bf16.mxu1 %v590_v0  ;;  %v410_v17 = vld [vmem:[%s718_s4] ss:$0 sm:$0xff]  ;;  %v489_v28 = vld [vmem:[#allocation7 + $0x18] sm:$0xff]  }
  0x4d   :  { %v488_v27 = vld [vmem:[#allocation7 + $0x10] sm:$0xff]  }
  0x4e   :  { %440 = vmatmul.mubr.msk.bf16.vlgmr.msra.gmra.mrb[0].mxu0 %vm91_vm2, %v89_v6  ;;  %446 = vmatmul.mubr.msk.bf16.vlgmr.msra.gmra.mrb[0].mxu1 %vm145_vm3, %v85_v7  ;;  %v411_v29 = vld [vmem:[%s720_s6] ss:$0 sm:$0xff] }
  0x4f   :  { %450 = vmatpush3.bf16.msra.mxu0 %v482_v8  ;;  %457 = vmatprep.mubr.msk.bf16.mxu0 %vm591_vm0, %v590_v0  ;;  %v417_v37 = vld [vmem:[%s722_s8] ss:$0 sm:$0xff] }
  0x50   :  { %451 = vmatprep.subr.bf16.mxu0 %v590_v0  ;;  %469 = vmatprep.mubr.msk.bf16.mxu1 %vm591_vm0, %v590_v0 }
  0x51   :  { %462 = vmatpush3.bf16.msra.mxu1 %v486_v12 }
  0x52   :  { %463 = vmatprep.subr.bf16.mxu1 %v590_v0 }
  0x53   :  { %452 = vmatpush3.bf16.msra.mxu0 %v483_v9 }
  0x54   :  { %453 = vmatprep.subr.bf16.mxu0 %v590_v0 }
  0x55   :  { %464 = vmatpush3.bf16.msra.mxu1 %v487_v13 }
  0x56   :  { %465 = vmatprep.subr.bf16.mxu1 %v590_v0 }
  0x57   :  { %454 = vmatpush3.bf16.msra.mxu0 %v484_v10 }
  0x58   :  { %455 = vmatprep.subr.bf16.mxu0 %v590_v0 }
  0x59   :  { %466 = vmatpush3.bf16.msra.mxu1 %v488_v27 }
  0x5a   :  { %467 = vmatprep.subr.bf16.mxu1 %v590_v0 }
  0x5b   :  { %456 = vmatpush3.bf16.msra.mxu0 %v485_v11 }
  0x5d   :  { %468 = vmatpush3.bf16.msra.mxu1 %v489_v28 }
 0x121   :  { %v133_v14 = vpop.f32.mrb[0].mxu0  ;;  %v183_v16 = vpop.f32.mrb[0].mxu1 }
 0x122   :  { %v441_v15 = vpop.f32.mrb[1].mxu0  ;;  %v184_v18 = vadd.f32 %v183_v16, %v133_v14  ;;  %v447_v20 = vpop.f32.mrb[1].mxu1 }
 0x123   :  { %v136_v19 = vpop.f32.mrb[2].mxu0  ;;  %v186_v22 = vpop.f32.mrb[2].mxu1 }
 0x124   :  { %v442_v21 = vpop.f32.mrb[3].mxu0  ;;  %v196_v23 = vadd.f32 %v410_v17, %v184_v18  ;;  %v448_v24 = vpop.f32.mrb[3].mxu1 }
 0x126   :  { %v197_v25 = vmax.f32 %v196_v23, 0.0 }
 0x128   :  { %v198_v26 = vpack.c.bf16 %v197_v25, %v197_v25 }
 0x12a   :  { %458 = vmatmul.mubr.msk.bf16.vlgmr.msra.gmra.mrb[4].mxu0 %vm238_vm4, %v198_v26 }
 0x1fd   :  { %v276_v30 = vpop.f32.mrb[4].mxu0 }
 0x1fe   :  { %v277_v31 = vadd.f32 %v411_v29, %v276_v30  ;;  %v459_v32 = vpop.f32.mrb[5].mxu0 }
 0x1ff   :  { %v279_v33 = vpop.f32.mrb[6].mxu0 }
 0x200   :  { %v282_v34 = vmax.f32 %v277_v31, 0.0  ;;  %v460_v35 = vpop.f32.mrb[7].mxu0 }
 0x202   :  { %v283_v36 = vpack.c.bf16 %v282_v34, %v282_v34 }
 0x204   :  { %470 = vmatmul.mubr.msk.bf16.vlgmr.msra.gmra.mrb[4].mxu1 %vm238_vm4, %v283_v36 }
 0x2d7   :  { %v360_v38 = vpop.f32.mrb[4].mxu1 }
 0x2d8   :  { %v471_v39 = vpop.f32.mrb[5].mxu1  ;;  %v361_v40 = vadd.f32 %v417_v37, %v360_v38 }
 0x2d9   :  { %v363_v41 = vpop.f32.mrb[6].mxu1 }
 0x2da   :  { %366 = vxpose.xlu0.b32.start.end [1/1] (short) (narrow) %v361_v40, 8  ;;  %v472_v42 = vpop.f32.mrb[7].mxu1 }
 0x35a   :  { %v382_v43 = vpop.trf.xlu0 }
 0x35b   :  { %399 = vst.msk [vmem:[%s723_s9] sm:$0x3] %vm398_vm5, %v382_v43 }
 0x35c   :  { %404 = vsyncpa [#allocation3], 1 }
 0x35d   :  { %405 = vsyncpa [#allocation5], 1 }
 0x35e   :  { %406 = vsyncpa [#allocation8], 1 }

</bundles_post_ra>
